<compile_context>
chip_gen: v7x
topology: tpu7x:2x2x1
jax: 0.10.0
libtpu: 0.0.40
codegen_flags: <defaults>
</compile_context>

<pallas_src>
import jax
import jax.numpy as jnp
from jax.experimental import pallas as pl
from jax.experimental.pallas import tpu as pltpu


def _round_up(x: int, m: int) -> int:
    return (x + m - 1) // m * m


def _default_tm() -> int:
    # Bigger row tiles amortize the ~0.35 us per-grid-step overhead; 1024 on
    # 128 MiB-VMEM parts (v5e/v6e), 512 on 64 MiB parts (v7x).
    try:
        vmem = pltpu.get_tpu_info().vmem_capacity_bytes
    except Exception:
        vmem = 64 << 20
    return 1024 if vmem >= (100 << 20) else 512


# ---------------------------------------------------------------------------
# Path A (default): scalar-prefetched DMA gather.  Vocab table stays in HBM.
# ---------------------------------------------------------------------------
def _dma_gather_kernel(ids_smem, obs_ref, w_ref, b_ref, emb_hbm, out_ref,
                       gather_buf, sem):
    """out = obs @ W + b + embed_table[ids]  for one row-tile of tokens.

    ids_smem:   (M_pad,) int32 SMEM (scalar-prefetched token ids)
    obs_ref:    (tm, D)  f32 VMEM tile (cast to bf16 in-kernel)
    w_ref:      (D, H)   bf16 VMEM, resident (constant index_map)
    b_ref:      (1, H)   f32 VMEM, resident
    emb_hbm:    (V, H)   HBM ref (memory_space=pl.ANY), DMA-gathered
    out_ref:    (tm, H)  out_dtype VMEM tile
    gather_buf: (tm, H)  VMEM scratch (embed-table dtype)
    sem:        DMA semaphore
    """
    tm = out_ref.shape[0]
    base = pl.program_id(0) * tm

    # Kick off one row DMA per token; they all land in gather_buf and overlap
    # with the projection matmul below.
    @pl.loop(0, tm)
    def _(r):
        tok = ids_smem[base + r]
        pltpu.make_async_copy(emb_hbm.at[pl.ds(tok, 1)],
                              gather_buf.at[pl.ds(r, 1)], sem).start()

    # Projection on the MXU with f32 accumulation; obs is cast in-kernel so the
    # HBM-side tensor stays f32 (no extra wrapper cast pass).
    proj = jnp.dot(obs_ref[...].astype(w_ref.dtype), w_ref[...],
                   preferred_element_type=jnp.float32)

    # Wait for all row gathers (one same-shaped wait per issued copy).
    @pl.loop(0, tm)
    def _(r):
        pltpu.make_async_copy(emb_hbm.at[pl.ds(0, 1)],
                              gather_buf.at[pl.ds(0, 1)], sem).wait()

    out_ref[...] = (proj + gather_buf[...].astype(jnp.float32)
                    + b_ref[...]).astype(out_ref.dtype)


# ---------------------------------------------------------------------------
# Path B (fallback for tiny vocab): one-hot MXU gather, table VMEM-resident.
# ---------------------------------------------------------------------------
def _onehot_kernel(obs_ref, w_ref, b_ref, ids_ref, emb_ref, out_ref):
    tm = out_ref.shape[0]
    V = emb_ref.shape[0]
    proj = jnp.dot(obs_ref[...].astype(w_ref.dtype), w_ref[...],
                   preferred_element_type=jnp.float32)
    ids = ids_ref[...]                                               # (tm, 1)
    onehot = jax.lax.broadcasted_iota(jnp.int32, (tm, V), 1) == ids  # (tm, V)
    txt = jnp.dot(onehot.astype(emb_ref.dtype), emb_ref[...],
                  preferred_element_type=jnp.float32)
    out_ref[...] = (proj + txt + b_ref[...]).astype(out_ref.dtype)


def encoder_inputs_embeds(obs, prev_txt, embed_table, w_proj, b_proj, *,
                          tm=None, compute_dtype=jnp.bfloat16,
                          out_dtype=jnp.bfloat16, gather_mode="auto"):
    """Computes encoder_proj(obs) + embedding(prev_txt).

    obs:         (B, L, 256) float32
    prev_txt:    (B, L) int token ids
    embed_table: (V, H)
    w_proj:      (256, H)  (transposed vs. torch Linear.weight)
    b_proj:      (H,)
    returns      (B, L, H) out_dtype
    """
    B, L, D = obs.shape
    V, H = embed_table.shape
    M = B * L

    if gather_mode == "auto":
        gather_mode = "onehot" if V <= 1024 else "dma"

    if tm is None:
        tm = _default_tm()
    tm = max(8, _round_up(int(tm), 8))          # (8,128) sublane alignment
    # Cap the row tile so the grid has >=2 blocks whenever M allows: a
    # single-block grid would leave one v7x TensorCore idle.
    tm_cap = _round_up(max(-(-M // 2), 8), 8)
    tm_eff = min(tm, tm_cap, _round_up(M, 8))
    M_pad = _round_up(M, tm_eff)
    grid = (M_pad // tm_eff,)

    # obs stays f32 here (cast happens inside the kernel); w/b casts are tiny.
    # TODO(synk): when wrapped in a module, cache the bf16 weight once at init.
    obs_flat = obs.reshape(M, D)
    ids_flat = prev_txt.reshape(M).astype(jnp.int32)
    if M_pad != M:
        obs_flat = jnp.pad(obs_flat, ((0, M_pad - M), (0, 0)))
        ids_flat = jnp.pad(ids_flat, (0, M_pad - M))
    w = w_proj.astype(compute_dtype)
    b2d = b_proj.reshape(1, H).astype(jnp.float32)

    obs_bytes = jnp.dtype(obs_flat.dtype).itemsize
    out_bytes = jnp.dtype(out_dtype).itemsize
    cbytes = jnp.dtype(compute_dtype).itemsize
    emb_bytes = jnp.dtype(embed_table.dtype).itemsize

    # Streaming tiles and residents are double-buffered by the default
    # pipeline; cap the scoped limit well below v7x's 64 MiB physical VMEM.
    common_bytes = (2 * tm_eff * D * obs_bytes     # obs tiles
                    + 2 * tm_eff * H * out_bytes   # out tiles
                    + 2 * D * H * cbytes           # resident weight
                    + 2 * 8 * H * 4)               # resident bias

    if gather_mode == "onehot":
        if V * H * cbytes > (4 << 20):
            raise ValueError(
                "one-hot gather keeps the vocab table VMEM-resident; "
                "use gather_mode='dma' for large vocabularies")
        emb = embed_table.astype(compute_dtype)
        ids_2d = ids_flat.reshape(M_pad, 1)
        tile_bytes = common_bytes + 2 * V * H * cbytes + 2 * tm_eff * 128 * 4
        vmem_limit = int(min(max(2 * tile_bytes, 16 << 20), 48 << 20))
        out_flat = pl.pallas_call(
            _onehot_kernel,
            out_shape=jax.ShapeDtypeStruct((M_pad, H), out_dtype),
            grid_spec=pltpu.PrefetchScalarGridSpec(
                num_scalar_prefetch=0,
                grid=grid,
                in_specs=[
                    pl.BlockSpec((tm_eff, D), lambda i: (i, 0)),  # obs rows
                    pl.BlockSpec((D, H), lambda i: (0, 0)),       # weight
                    pl.BlockSpec((1, H), lambda i: (0, 0)),       # bias
                    pl.BlockSpec((tm_eff, 1), lambda i: (i, 0)),  # token ids
                    pl.BlockSpec((V, H), lambda i: (0, 0)),       # table
                ],
                out_specs=pl.BlockSpec((tm_eff, H), lambda i: (i, 0)),
            ),
            compiler_params=pltpu.CompilerParams(
                dimension_semantics=("parallel",),
                vmem_limit_bytes=vmem_limit,
            ),
        )(obs_flat, w, b2d, ids_2d, emb)
    else:
        # Table never leaves HBM and is never cast; rows are DMA-gathered.
        tile_bytes = common_bytes + tm_eff * H * emb_bytes
        vmem_limit = int(min(max(2 * tile_bytes, 16 << 20), 48 << 20))
        out_flat = pl.pallas_call(
            _dma_gather_kernel,
            out_shape=jax.ShapeDtypeStruct((M_pad, H), out_dtype),
            grid_spec=pltpu.PrefetchScalarGridSpec(
                num_scalar_prefetch=1,                    # ids -> SMEM
                grid=grid,
                in_specs=[
                    pl.BlockSpec((tm_eff, D), lambda i, ids: (i, 0)),  # obs
                    pl.BlockSpec((D, H), lambda i, ids: (0, 0)),       # weight
                    pl.BlockSpec((1, H), lambda i, ids: (0, 0)),       # bias
                    pl.BlockSpec(memory_space=pl.ANY),                 # table (HBM)
                ],
                out_specs=pl.BlockSpec((tm_eff, H), lambda i, ids: (i, 0)),
                scratch_shapes=[
                    pltpu.VMEM((tm_eff, H), embed_table.dtype),
                    pltpu.SemaphoreType.DMA,
                ],
            ),
            compiler_params=pltpu.CompilerParams(
                dimension_semantics=("parallel",),
                vmem_limit_bytes=vmem_limit,
            ),
        )(ids_flat, obs_flat, w, b2d, embed_table)

    return out_flat[:M].reshape(B, L, H)


if __name__ == "__main__":
    # Shapes consistent with the module forward: Linear(256 -> hidden) plus an
    # embedding(vocab, hidden) lookup.  Small toy: hidden=128, vocab=512.
    B, L, D, H, V = 2, 8, 256, 128, 512

    key = jax.random.PRNGKey(0)
    k_obs, k_txt, k_emb, k_w, k_b = jax.random.split(key, 5)

    obs = jax.random.normal(k_obs, (B, L, D), dtype=jnp.float32)
    prev_txt = jax.random.randint(k_txt, (B, L), 0, V, dtype=jnp.int32)
    embed_table = jax.random.normal(k_emb, (V, H), dtype=jnp.float32) * 0.02

    # NOTE: the torch module zero-inits encoder_proj.weight/.bias; nonzero
    # random weights are used here so the matmul + bias path is validated.
    w_proj = jax.random.normal(k_w, (D, H), dtype=jnp.float32) * 0.05
    b_proj = jax.random.normal(k_b, (H,), dtype=jnp.float32) * 0.05

    # bf16-rounded reference operands (kernel computes in bf16 on the MXU).
    obs_c = obs.astype(jnp.bfloat16).astype(jnp.float32)
    w_c = w_proj.astype(jnp.bfloat16).astype(jnp.float32)
    emb_bf = embed_table.astype(jnp.bfloat16).astype(jnp.float32)

    # --- Path 1: tiny vocab -> one-hot fallback (auto dispatch) ------------
    out = encoder_inputs_embeds(obs, prev_txt, embed_table, w_proj, b_proj)
    out = jax.block_until_ready(out)
    ref = jnp.einsum("bld,dh->blh", obs_c, w_c) + b_proj + emb_bf[prev_txt]
    assert out.shape == (B, L, H)
    assert out.dtype == jnp.bfloat16
    assert jnp.allclose(out.astype(jnp.float32), ref, atol=5e-2, rtol=5e-2), \
        float(jnp.max(jnp.abs(out.astype(jnp.float32) - ref)))

    # --- Path 2: DMA-gather path, B*L not a multiple of the row tile -------
    B2, L2 = 3, 7
    obs2 = jax.random.normal(k_obs, (B2, L2, D), dtype=jnp.float32)
    txt2 = jax.random.randint(k_txt, (B2, L2), 0, V, dtype=jnp.int32)
    out2 = encoder_inputs_embeds(obs2, txt2, embed_table, w_proj, b_proj,
                                 tm=8, gather_mode="dma",
                                 out_dtype=jnp.float32)
    out2 = jax.block_until_ready(out2)
    obs2_c = obs2.astype(jnp.bfloat16).astype(jnp.float32)
    ref2 = (jnp.einsum("bld,dh->blh", obs2_c, w_c) + b_proj
            + embed_table[txt2])
    assert out2.shape == (B2, L2, H)
    assert jnp.allclose(out2, ref2, atol=5e-2, rtol=5e-2), \
        float(jnp.max(jnp.abs(out2 - ref2)))

    print("KERNEL_OK")
</pallas_src>

<mosaic_0001>
module attributes {stable_mosaic.version = 11 : i64} {
  func.func @_onehot_kernel(%arg0: i32, %arg1: memref<8x256xf32, #tpu.memory_space<vmem>>, %arg2: memref<256x128xbf16, #tpu.memory_space<vmem>>, %arg3: memref<1x128xf32, #tpu.memory_space<vmem>>, %arg4: memref<8x1xi32, #tpu.memory_space<vmem>>, %arg5: memref<512x128xbf16, #tpu.memory_space<vmem>>, %arg6: memref<8x128xbf16, #tpu.memory_space<vmem>>) attributes {dimension_semantics = [#tpu.dimension_semantics<parallel>], iteration_bounds = array<i64: 2>, scalar_prefetch = 0 : i64, scratch_operands = 0 : i64, tpu.core_type = #tpu.core_type<tc>, window_params = [{transform_indices = @transform_0, window_bounds = array<i64: 8, 256>}, {pipeline_mode = #tpu.pipeline_mode<synchronous>, transform_indices = @transform_1, window_bounds = array<i64: 256, 128>}, {pipeline_mode = #tpu.pipeline_mode<synchronous>, transform_indices = @transform_2, window_bounds = array<i64: 1, 128>}, {transform_indices = @transform_3, window_bounds = array<i64: 8, 1>}, {pipeline_mode = #tpu.pipeline_mode<synchronous>, transform_indices = @transform_4, window_bounds = array<i64: 512, 128>}, {transform_indices = @transform_5, window_bounds = array<i64: 8, 128>}]} {
    %c0 = arith.constant 0 : index
    %c0_0 = arith.constant 0 : index
    %0 = vector.load %arg1[%c0, %c0_0] : memref<8x256xf32, #tpu.memory_space<vmem>>, vector<8x256xf32>
    %1 = arith.truncf %0 : vector<8x256xf32> to vector<8x256xbf16>
    %c0_1 = arith.constant 0 : index
    %c0_2 = arith.constant 0 : index
    %2 = vector.load %arg2[%c0_1, %c0_2] : memref<256x128xbf16, #tpu.memory_space<vmem>>, vector<256x128xbf16>
    %cst = arith.constant dense<0.000000e+00> : vector<8x128xf32>
    %3 = tpu.matmul %1, %2, %cst {dimension_numbers = #tpu.dot_dimension_numbers<[1], [0], [0], [1], [0, 0, 1, 1], [], []>} : vector<8x256xbf16>, vector<256x128xbf16>, vector<8x128xf32> -> vector<8x128xf32>
    %c0_3 = arith.constant 0 : index
    %c0_4 = arith.constant 0 : index
    %4 = vector.load %arg4[%c0_3, %c0_4] : memref<8x1xi32, #tpu.memory_space<vmem>>, vector<8x1xi32>
    %5 = tpu.iota {dimensions = array<i32: 1>} : vector<8x512xi32>
    %6 = vector.broadcast %4 : vector<8x1xi32> to vector<8x512xi32>
    %7 = arith.cmpi eq, %5, %6 : vector<8x512xi32>
    %8 = arith.extui %7 : vector<8x512xi1> to vector<8x512xi32>
    %9 = arith.sitofp %8 : vector<8x512xi32> to vector<8x512xf32>
    %10 = arith.truncf %9 : vector<8x512xf32> to vector<8x512xbf16>
    %c0_5 = arith.constant 0 : index
    %c0_6 = arith.constant 0 : index
    %11 = vector.load %arg5[%c0_5, %c0_6] : memref<512x128xbf16, #tpu.memory_space<vmem>>, vector<512x128xbf16>
    %cst_7 = arith.constant dense<0.000000e+00> : vector<8x128xf32>
    %12 = tpu.matmul %10, %11, %cst_7 {dimension_numbers = #tpu.dot_dimension_numbers<[1], [0], [0], [1], [0, 0, 1, 1], [], []>} : vector<8x512xbf16>, vector<512x128xbf16>, vector<8x128xf32> -> vector<8x128xf32>
    %13 = arith.addf %3, %12 : vector<8x128xf32>
    %c0_8 = arith.constant 0 : index
    %c0_9 = arith.constant 0 : index
    %14 = vector.load %arg3[%c0_8, %c0_9] : memref<1x128xf32, #tpu.memory_space<vmem>>, vector<1x128xf32>
    %15 = vector.broadcast %14 : vector<1x128xf32> to vector<8x128xf32>
    %16 = arith.addf %13, %15 : vector<8x128xf32>
    %17 = arith.truncf %16 : vector<8x128xf32> to vector<8x128xbf16>
    %c0_10 = arith.constant 0 : index
    %c0_11 = arith.constant 0 : index
    %18 = vector.load %arg6[%c0_10, %c0_11] : memref<8x128xbf16, #tpu.memory_space<vmem>>, vector<8x128xbf16>
    tpu.vector_store %arg6[%c0_10, %c0_11], %17 {strides = array<i32>} : memref<8x128xbf16, #tpu.memory_space<vmem>>, vector<8x128xbf16>,
    return
  }
  func.func @transform_0(%arg0: i32) -> (i32, i32) {
    %c0_i32 = arith.constant 0 : i32
    %c0_i32_0 = arith.constant 0 : i32
    return %arg0, %c0_i32 : i32, i32
  }
  func.func @transform_1(%arg0: i32) -> (i32, i32) {
    %c0_i32 = arith.constant 0 : i32
    %c0_i32_0 = arith.constant 0 : i32
    %c0_i32_1 = arith.constant 0 : i32
    return %c0_i32, %c0_i32_0 : i32, i32
  }
  func.func @transform_2(%arg0: i32) -> (i32, i32) {
    %c0_i32 = arith.constant 0 : i32
    %c0_i32_0 = arith.constant 0 : i32
    %c0_i32_1 = arith.constant 0 : i32
    return %c0_i32, %c0_i32_0 : i32, i32
  }
  func.func @transform_3(%arg0: i32) -> (i32, i32) {
    %c0_i32 = arith.constant 0 : i32
    %c0_i32_0 = arith.constant 0 : i32
    return %arg0, %c0_i32 : i32, i32
  }
  func.func @transform_4(%arg0: i32) -> (i32, i32) {
    %c0_i32 = arith.constant 0 : i32
    %c0_i32_0 = arith.constant 0 : i32
    %c0_i32_1 = arith.constant 0 : i32
    return %c0_i32, %c0_i32_0 : i32, i32
  }
  func.func @transform_5(%arg0: i32) -> (i32, i32) {
    %c0_i32 = arith.constant 0 : i32
    %c0_i32_0 = arith.constant 0 : i32
    return %arg0, %c0_i32 : i32, i32
  }
}

</mosaic_0001>

<bundles_post_ra>
// kernel: tpu_custom_call.1
= control target key start
LH: loop header
LB: loop body
LE: loop exit
PB: predicated region body
PF: predicated region fallthrough
CT: control target
= control target key end

     0   :  { %10 = vsyncpa [#allocation3], 0  ;;  %s1650_s0 = inlined_call_operand.hbm [shape: f32[16,256], index: 0, kind: input, shape index: {}]   ;;  %s1651_s1 = inlined_call_operand.hbm [shape: bf16[256,128], index: 1, kind: input, shape index: {}]   ;;  %s1652_s2 = inlined_call_operand.vmem [shape: f32[1,128], index: 2, kind: input, shape index: {}]   ;;  %s1653_s3 = inlined_call_operand.vmem [shape: s32[16,1], index: 3, kind: input, shape index: {}]   ;;  %s1654_s4 = inlined_call_operand.hbm [shape: bf16[512,128], index: 4, kind: input, shape index: {}]   ;;  %s1655_s5 = inlined_call_operand.hbm [shape: bf16[16,128], index: 5, kind: output, shape index: {}]  }
   0x1   :  { %12 = vsyncpa [#allocation3 + $0x1], 0 }
   0x2   :  { %13 = vsyncpa [#allocation6], 0 }
   0x3   :  { %14 = vsyncpa [#allocation4], 0 }
   0x4   :  { %16 = vsyncpa [#allocation4 + $0x1], 0  ;;  %s1408_s18 = smov 0   ;;  %s1410_s19 = smov 0  }
   0x5   :  { %s1412_s20 = smov 0   ;;  %s1414_s21 = smov 0  }
   0x6 LB: > { %s1429_s22 = sadd.s32 4294967295, %s1368_s21   ;;  %s946_s23 = sadd.s32 4294967294, %s1368_s21   ;;  %s1368_s21 = sphi %s1414_s21, %s1675_s21   ;;  %s1364_s20 = sphi %s1412_s20, %s1674_s20   ;;  %s1360_s19 = sphi %s1410_s19, %s1673_s19   ;;  %s1356_s18 = sphi %s1408_s18, %s1672_s18  }
   0x7   : > { %p42_p0 = scmp.ne.s32.totalorder %s1360_s19, %s1356_s18  ;;  %p1656_p1 = scmp.eq.s32.totalorder %s1429_s22, 0 }
   0x8   : > { %p161_p3 = scmp.eq.s32.totalorder %s946_s23, 1  ;;  %p947_p5 = scmp.ge.s32.totalorder %s1368_s21, 1 }
   0x9   : > { %p1438_p4 = por %p1656_p1, %p42_p0  ;;  %p168_p7 = scmp.lt.s32.totalorder %s1368_s21, 3 }
   0xa   : > { %p1443_p6 = por %p161_p3, %p42_p0  ;;  %s1370_s27 = smov [#allocation5]  }
   0xb   : > { %s1659_s24 = scalar_select %p1438_p4, 1, 0 }
   0xc   : > { %s1660_s25 = scalar_select %p1443_p6, 1, 0 }
   0xd   : > { %p1448_p8 = pnand %p947_p5, %p168_p7  ;;  %s180_s28 = sshll.u32 %s1370_s27, 4  ;;  %s1452_s28 = int_to_ptr.vmem [resolvable:$true] %s180_s28 }
   0xe   : > { %s1371_s30 = smov [#allocation7]   ;;  %s1212_s9 = scalar_lea.hbm %s1651_s1, 2048 }
   0xf   : > { %p1104_p9 = pneg %p1448_p8  ;;  %s196_s6 = sshll.u32 %s1371_s30, 4  ;;  %s1463_s6 = int_to_ptr.vmem [resolvable:$true] %s196_s6 }
  0x10   : > { %p1213_p12 = scmp.ne.s32.totalorder %s1651_s1, %s1212_s9  ;;  %p1219_p5 = scmp.lt.u32.totalorder %s1212_s9, %s1651_s1 }
  0x11   : > { %p1459_p11 = pnand %p1104_p9, %p1656_p1 }
  0x13   : > { %p1214_p13 = pneg %p1459_p11 }
  0x15   : > { %p1215_p0 = pnand %p1214_p13, %p1213_p12 }
  0x17   : > { %p1216_p3 = pneg %p1215_p0 }
  0x19   : > { %p1221_p7 = pnand %p1219_p5, %p1216_p3 }
  0x1b   : > { %1224 = shalt.err (!%p1221_p7)
}
  0x1c   : > { %s1225_s14 = scalar_lea.vmem %s1452_s28, 2048  ;;  %p1233_p2 = scmp.lt.s32.totalorder %s1452_s28, %s1452_s28 }
  0x1d   : > { %p1226_p9 = scmp.ne.s32.totalorder %s1452_s28, %s1225_s14  ;;  %p1234_p12 = scmp.lt.s32.totalorder %s1225_s14, %s1225_s14 }
  0x1f   : > { %p1228_p10 = pnand %p1226_p9, %p1214_p13  ;;  %p1235_p0 = por %p1234_p12, %p1233_p2 }
  0x21   : > { %p1229_p1 = pneg %p1228_p10 }
  0x23   : > { %p1236_p6 = pnand %p1235_p0, %p1229_p1 }
  0x25   : > { %1239 = shalt.err (!%p1236_p6)
}
  0x26   : > { %s1372_s15 = smov 64   ;;  %s1373_s16 = smov 4  }
  0x27   : > { %1107 = dma.hbm_to_vmem [thread:$0]  (!%p1459_p11), %s1651_s1, 2048, %s1452_s28, [#allocation6], %s1372_s15, %s1372_s15, %s1373_s16  }
  0x28   : > { %s1240_s7 = scalar_lea.hbm %s1654_s4, 4096 }
  0x29   : > { %p1241_p2 = scmp.ne.s32.totalorder %s1654_s4, %s1240_s7  ;;  %p1247_p10 = scmp.lt.u32.totalorder %s1240_s7, %s1654_s4 }
  0x2b   : > { %p1243_p1 = pnand %p1241_p2, %p1214_p13 }
  0x2d   : > { %p1244_p6 = pneg %p1243_p1 }
  0x2f   : > { %p1249_p3 = pnand %p1247_p10, %p1244_p6 }
  0x31   : > { %1252 = shalt.err (!%p1249_p3)
}
  0x32   : > { %s1253_s28 = scalar_lea.vmem %s1463_s6, 4096  ;;  %p1261_p12 = scmp.lt.s32.totalorder %s1463_s6, %s1463_s6 }
  0x33   : > { %p1254_p5 = scmp.ne.s32.totalorder %s1463_s6, %s1253_s28  ;;  %p1262_p0 = scmp.lt.s32.totalorder %s1253_s28, %s1253_s28 }
  0x35   : > { %p1256_p7 = pnand %p1254_p5, %p1214_p13  ;;  %p1263_p2 = por %p1262_p0, %p1261_p12 }
  0x37   : > { %p1257_p9 = pneg %p1256_p7 }
  0x39   : > { %p1264_p1 = pnand %p1263_p2, %p1257_p9 }
  0x3b   : > { %1267 = shalt.err (!%p1264_p1)
}
  0x3c   : > { %1110 = dma.hbm_to_vmem [thread:$0]  (!%p1459_p11), %s1654_s4, 4096, %s1463_s6, [#allocation6], %s1372_s15, %s1372_s15, %s1373_s16  }
  0x3d   : > { %s1518_s14 = sadd.s32 1, %s1368_s21   ;;  %s29_s29 = sadd.s32 1, %s1364_s20 }
  0x3e   : > { %s26_s17 = ssub.s32 %s1368_s21, %s1518_s14  ;;  %p36_p13 = scmp.ne.s32.totalorder %s1364_s20, %s1360_s19 }
  0x3f   : > { %p27_p6 = scmp.eq.s32.totalorder %s26_s17, 0  ;;  %p37_p10 = scmp.eq.s32.totalorder %s1368_s21, 0 }
  0x40   : > { %p1663_p3 = scmp.eq.s32.totalorder %s1429_s22, 1  ;;  %p1121_p7 = scmp.lt.s32.totalorder %s1368_s21, 2 }
  0x41   : > { %s1534_s27 = scalar_select %p27_p6, %s1364_s20, %s29_s29  }
  0x42   : > { %p1528_p5 = por %p1663_p3, %p36_p13  ;;  %p38_p9 = por %p37_p10, %p36_p13 }
  0x43   : > { %s210_s30 = sand.u32 1, %s1364_s20   ;;  %s1025_s6 = sshll.u32 %s1368_s21, 8 }
  0x44   : > { %s1664_s23 = scalar_select %p1528_p5, 1, 0 }
  0x45   : > { %s951_s7 = sshll.u32 %s210_s30, 4  ;;  %s1541_s8 = scalar_lea.hbm %s1650_s0, %s1025_s6 }
  0x46   : > { %s214_s9 = scalar_lea.vmem [#allocation2], %s951_s7  ;;  %p1545_p11 = pnand %p1121_p7, %p38_p9 }
  0x47   : > { %s222_s10 = sshll.u32 %s214_s9, 4  ;;  %s211_s28 = scalar_lea.sflag [#allocation3], %s210_s30  ;;  %s1543_s10 = int_to_ptr.vmem [resolvable:$true] %s222_s10 }
  0x48   : > { %s1268_s12 = scalar_lea.hbm %s1541_s8, 256  ;;  %p1270_p0 = pneg %p1545_p11 }
  0x49   : > { %p1269_p12 = scmp.ne.s32.totalorder %s1541_s8, %s1268_s12  ;;  %s1273_s17 = scalar_lea.hbm %s1650_s0, 512 }
  0x4a   : > { %p1274_p13 = scmp.lt.u32.totalorder %s1541_s8, %s1650_s0  ;;  %p1275_p6 = scmp.lt.u32.totalorder %s1273_s17, %s1268_s12 }
  0x4b   : > { %p1271_p2 = pnand %p1270_p0, %p1269_p12  ;;  %p1277_p3 = scmp.lt.u32.totalorder %s1268_s12, %s1541_s8 }
  0x4c   : > { %p1276_p10 = por %p1275_p6, %p1274_p13 }
  0x4d   : > { %p1272_p1 = pneg %p1271_p2 }
  0x4e   : > { %p1278_p7 = por %p1277_p3, %p1276_p10 }
  0x50   : > { %p1279_p9 = pnand %p1278_p7, %p1272_p1 }
  0x52   : > { %1282 = shalt.err (!%p1279_p9)
}
  0x53   : > { %s1283_s30 = scalar_lea.vmem %s1543_s10, 256  ;;  %s1374_s15 = smov [#allocation2]  }
  0x54   : > { %p1284_p12 = scmp.ne.s32.totalorder %s1543_s10, %s1283_s30  ;;  %s1288_s16 = sshll.u32 %s1374_s15, 4  ;;  %s1289_s16 = int_to_ptr.vmem [resolvable:$false] %s1288_s16 }
  0x55   : > { %s1290_s9 = scalar_lea.vmem %s1289_s16, 512  ;;  %p1291_p4 = scmp.lt.s32.totalorder %s1543_s10, %s1289_s16 }
  0x56   : > { %p1286_p2 = pnand %p1284_p12, %p1270_p0  ;;  %p1292_p13 = scmp.lt.s32.totalorder %s1290_s9, %s1283_s30 }
  0x58   : > { %p1287_p5 = pneg %p1286_p2  ;;  %p1293_p6 = por %p1292_p13, %p1291_p4 }
  0x5a   : > { %p1294_p10 = pnand %p1293_p6, %p1287_p5 }
  0x5c   : > { %1297 = shalt.err (!%p1294_p10)
}
  0x5d   : > { %1114 = dma.hbm_to_vmem [thread:$0]  (!%p1545_p11), %s1541_s8, 256, %s1543_s10, %s211_s28  }
  0x5e   : > { %238 = sbr.rel (%p1448_p8) target bundleno = 511 (0x1ff), region = 40  ;;  %s1577_s12 = sand.u32 (!%p1448_p8), 1, %s1360_s19  }
  0x5f   : > { %s955_s13 = sshll.u32 (!%p1448_p8), %s1577_s12, 4  ;;  %s241_s29 = scalar_lea.sflag (!%p1448_p8), [#allocation3], %s1577_s12 }
  0x60   : > { %s1581_s17 = scalar_lea.vmem (!%p1448_p8), [#allocation2], %s955_s13  ;;  %p1666_p4 = scmp.ne.s32.totalorder (!%p1448_p8), %s1659_s24, 0 }
  0x65   : > { %1343 = dma.done.wait (%p1666_p4), %s241_s29, 256  }
  0x66   : > { %1345 = vsyncadd (%p1666_p4), %s241_s29, 4294967040  ;;  %p1667_p5 = scmp.eq.s32.totalorder %s1429_s22, 0 }
  0x68   : > { %1347 = dma.done.wait (%p1667_p5), [#allocation6], 6144   ;;  %p1668_p8 = pmov %p1667_p5 }
  0x69   : > { %p283_p11 = scmp.lt.s32.totalorder %s1429_s22, 1  ;;  %v1375_v0 = vmov 0   ;;  %v1164_v2 = vld [vmem:[#allocation7 + $0x40] sm:$0xff]   ;;  %v1168_v6 = vld [vmem:[#allocation7 + $0x48] sm:$0xff]   ;;  %v1172_v10 = vld [vmem:[#allocation7 + $0x50] sm:$0xff]   ;;  %v325_v35 = vlaneseq  ;;  %s958_s24 = sshll.u32 %s1577_s12, 2 }
  0x6a   : > { %1349 = vsyncadd (%p1668_p8), [#allocation6], 4294961152  ;;  %1163 = vset.pattern.permute.xlu0 %v1375_v0  ;;  %v1165_v3 = vld [vmem:[#allocation7] sm:$0xff]   ;;  %1026 = vmatprep.subr.bf16.mxu0 %v1164_v2  ;;  %v1169_v7 = vld [vmem:[#allocation7 + $0x8] sm:$0xff]   ;;  %v1376_v43 = vmov 1.0|1.0  }
  0x6b   : > { %s284_s26 = scalar_select %p283_p11, %s1429_s22, 1  ;;  %v1166_v4 = vld [vmem:[#allocation7 + $0xc0] sm:$0xff]   ;;  %1027 = vmatpush3.bf16.msra.mxu0 %v1165_v3  ;;  %v1170_v8 = vld [vmem:[#allocation7 + $0xc8] sm:$0xff]   ;;  %v1173_v11 = vld [vmem:[#allocation7 + $0x10] sm:$0xff]   ;;  %v326_v36 = vand.u32 127, %v325_v35 }
  0x6c   : > { %v1167_v5 = vld [vmem:[#allocation7 + $0x80] sm:$0xff]   ;;  %1048 = vmatprep.subr.bf16.mxu1 %v1166_v4  ;;  %1028 = vmatprep.subr.bf16.mxu0 %v1168_v6  ;;  %v1171_v9 = vld [vmem:[#allocation7 + $0x88] sm:$0xff]   ;;  %v1174_v12 = vld [vmem:[#allocation7 + $0xd0] sm:$0xff]   ;;  %s1022_s30 = sshll.u32 %s1429_s22, 6  ;;  %s282_s15 = scalar_lea.vmem [#allocation8], %s958_s24 }
  0x6d   : > { %s959_s8 = sshll.u32 %s284_s26, 3  ;;  %1049 = vmatpush3.bf16.msra.mxu1 %v1167_v5  ;;  %v1175_v13 = vld [vmem:[#allocation7 + $0x90] sm:$0xff]   ;;  %v1176_v14 = vld [vmem:[#allocation7 + $0x58] sm:$0xff]   ;;  %v1180_v18 = vld [vmem:[#allocation7 + $0x60] sm:$0xff]   ;;  %v327_v37 = vadd.s32 128, %v326_v36  ;;  %v329_v38 = vadd.s32 384, %v326_v36  ;;  %s1606_s29 = scalar_lea.hbm %s1655_s5, %s1022_s30 }
  0x6e   : > { %s286_s28 = scalar_lea.vmem %s1653_s3, %s959_s8  ;;  %1050 = vmatprep.subr.bf16.mxu1 %v1170_v8  ;;  %v1177_v15 = vld [vmem:[#allocation7 + $0x18] sm:$0xff]   ;;  %v1181_v19 = vld [vmem:[#allocation7 + $0x20] sm:$0xff]   ;;  %v1184_v22 = vld [vmem:[#allocation7 + $0x68] sm:$0xff]   ;;  %v328_v39 = vadd.s32 256, %v326_v36  ;;  %s845_s16 = sshll.u32 %s282_s15, 4  ;;  %s1608_s16 = int_to_ptr.vmem [resolvable:$true] %s845_s16 }
  0x6f   : > { %v324_v1 = vld [vmem:[%s286_s28] sm:$0xff]  ;;  %1029 = vmatpush3.bf16.msra.mxu0 %v1169_v7  ;;  %v1178_v16 = vld [vmem:[#allocation7 + $0xd8] sm:$0xff]   ;;  %v1185_v23 = vld [vmem:[#allocation7 + $0x28] sm:$0xff]   ;;  %s1298_s26 = scalar_lea.vmem %s1608_s16, 64  ;;  %p1669_p1 = scmp.ne.s32.totalorder %s1664_s23, 0 }
  0x70   : > { %331 = vperm.xlu0 %1163, %v324_v1   ;;  %1030 = vmatprep.subr.bf16.mxu0 %v1172_v10  ;;  %v1179_v17 = vld [vmem:[#allocation7 + $0x98] sm:$0xff]   ;;  %v1182_v20 = vld [vmem:[#allocation7 + $0xe0] sm:$0xff]   ;;  %v1186_v24 = vld [vmem:[#allocation7 + $0xe8] sm:$0xff]   ;;  %p1299_p0 = scmp.ne.s32.totalorder %s1608_s16, %s1298_s26  ;;  %s1377_s22 = smov [#allocation8]  }
  0x71   : > { %1051 = vmatpush3.bf16.msra.mxu1 %v1171_v9  ;;  %v1183_v21 = vld [vmem:[#allocation7 + $0xa0] sm:$0xff]   ;;  %v1187_v25 = vld [vmem:[#allocation7 + $0xa8] sm:$0xff]   ;;  %v1188_v26 = vld [vmem:[#allocation7 + $0x70] sm:$0xff]   ;;  %s1302_s8 = sshll.u32 %s1377_s22, 4  ;;  %s1303_s8 = int_to_ptr.vmem [resolvable:$false] %s1302_s8 }
  0x72   : > { %1052 = vmatprep.subr.bf16.mxu1 %v1174_v12  ;;  %v1189_v27 = vld [vmem:[#allocation7 + $0x30] sm:$0xff]   ;;  %v1192_v30 = vld [vmem:[#allocation7 + $0x78] sm:$0xff]   ;;  %v1196_v34 = vld [vmem:[#allocation5 + $0x40] sm:$0xff]   ;;  %p1300_p3 = pnand %p1299_p0, %p1669_p1  ;;  %s1304_s10 = scalar_lea.vmem %s1303_s8, 128 }
  0x73   : > { %1031 = vmatpush3.bf16.msra.mxu0 %v1173_v11  ;;  %v1190_v28 = vld [vmem:[#allocation7 + $0xf0] sm:$0xff]   ;;  %v1193_v31 = vld [vmem:[#allocation7 + $0x38] sm:$0xff]   ;;  %v1197_v42 = vld [vmem:[#allocation5] sm:$0xff]   ;;  %p1305_p9 = scmp.lt.s32.totalorder %s1608_s16, %s1303_s8  ;;  %p1306_p12 = scmp.lt.s32.totalorder %s1304_s10, %s1298_s26 }
  0x74   : > { %1032 = vmatprep.subr.bf16.mxu0 %v1176_v14  ;;  %v1191_v29 = vld [vmem:[#allocation7 + $0xb0] sm:$0xff]   ;;  %v1194_v32 = vld [vmem:[#allocation7 + $0xf8] sm:$0xff]   ;;  %v1198_v44 = vld [vmem:[#allocation5 + $0x48] sm:$0xff]   ;;  %p1301_p7 = pneg %p1300_p3 }
  0x75   : > { %1053 = vmatpush3.bf16.msra.mxu1 %v1175_v13  ;;  %v1195_v33 = vld [vmem:[#allocation7 + $0xb8] sm:$0xff]   ;;  %v1199_v46 = vld [vmem:[#allocation5 + $0x8] sm:$0xff]   ;;  %v1200_v47 = vld [vmem:[#allocation5 + $0x50] sm:$0xff]   ;;  %p1307_p2 = por %p1306_p12, %p1305_p9 }
  0x76   : > { %1054 = vmatprep.subr.bf16.mxu1 %v1178_v16  ;;  %v289_v41 = vld [vmem:[%s1581_s17 + $0x8] sm:$0xff]  ;;  %v1201_v48 = vld [vmem:[#allocation5 + $0x10] sm:$0xff]   ;;  %v1204_v51 = vld [vmem:[#allocation5 + $0x60] sm:$0xff]  }
  0x77   : > { %1033 = vmatpush3.bf16.msra.mxu0 %v1177_v15  ;;  %v291_v45 = vpack.c.bf16 %v289_v41, %v289_v41  ;;  %v1202_v49 = vld [vmem:[#allocation5 + $0x58] sm:$0xff]   ;;  %v1205_v52 = vld [vmem:[#allocation5 + $0x20] sm:$0xff]   ;;  %v1206_v53 = vld [vmem:[#allocation5 + $0x68] sm:$0xff]   ;;  %p1308_p13 = pnand %p1307_p2, %p1301_p7 }
  0x78   : > { %1034 = vmatprep.subr.bf16.mxu0 %v1180_v18  ;;  %v1203_v50 = vld [vmem:[#allocation5 + $0x18] sm:$0xff]   ;;  %v1207_v54 = vld [vmem:[#allocation5 + $0x28] sm:$0xff]   ;;  %v1208_v55 = vld [vmem:[#allocation5 + $0x70] sm:$0xff]  }
  0x79   : > { %1055 = vmatpush3.bf16.msra.mxu1 %v1179_v17  ;;  %v1209_v56 = vld [vmem:[#allocation5 + $0x30] sm:$0xff]   ;;  %v1210_v57 = vld [vmem:[#allocation5 + $0x78] sm:$0xff]   ;;  %v1020_v12 = vld [vmem:[%s1652_s2] ss:$0 sm:$0xff] }
  0x7a   : > { %1056 = vmatprep.subr.bf16.mxu1 %v1182_v20  ;;  %v1211_v58 = vld [vmem:[#allocation5 + $0x38] sm:$0xff]   ;;  %v288_v59 = vld [vmem:[%s1581_s17] sm:$0xff]  ;;  %s832_s17 = scalar_lea.sflag [#allocation4], %s1577_s12 }
  0x7b   : > { %1035 = vmatpush3.bf16.msra.mxu0 %v1181_v19  ;;  %v290_v60 = vpack.c.bf16 %v288_v59, %v288_v59 }
  0x7c   : > { %1036 = vmatprep.subr.bf16.mxu0 %v1184_v22 }
  0x7d   : > { %1057 = vmatpush3.bf16.msra.mxu1 %v1183_v21 }
  0x7e   : > { %1058 = vmatprep.subr.bf16.mxu1 %v1186_v24 }
  0x7f   : > { %1037 = vmatpush3.bf16.msra.mxu0 %v1185_v23 }
  0x80   : > { %1038 = vmatprep.subr.bf16.mxu0 %v1188_v26 }
  0x81   : > { %1059 = vmatpush3.bf16.msra.mxu1 %v1187_v25 }
  0x82   : > { %1060 = vmatprep.subr.bf16.mxu1 %v1190_v28 }
  0x83   : > { %1039 = vmatpush3.bf16.msra.mxu0 %v1189_v27 }
  0x84   : > { %1040 = vmatprep.subr.bf16.mxu0 %v1192_v30 }
  0x85   : > { %1061 = vmatpush3.bf16.msra.mxu1 %v1191_v29 }
  0x86   : > { %1062 = vmatprep.subr.bf16.mxu1 %v1194_v32 }
  0x87   : > { %1041 = vmatpush3.bf16.msra.mxu0 %v1193_v31 }
  0x88   : > { %1070 = vmatprep.subr.bf16.mxu0 %v1196_v34 }
  0x89   : > { %1063 = vmatpush3.bf16.msra.mxu1 %v1195_v33 }
  0xef   : > { %v332_v40 = vpop.permute.xlu0 %331 }
  0xf0   : > { %vm333_vm0 = vcmp.eq.s32.totalorder %v326_v36, %v332_v40  ;;  %vm334_vm1 = vcmp.eq.s32.totalorder %v327_v37, %v332_v40  ;;  %vm336_vm2 = vcmp.eq.s32.totalorder %v329_v38, %v332_v40  ;;  %vm335_vm3 = vcmp.eq.s32.totalorder %v328_v39, %v332_v40 }
  0xf1   : > { %vm996_vm4 = vmpackc.low %vm334_vm1, %vm334_vm1 }
  0xf2   : > { %997 = vmatprep.mubr.msk.bf16.mxu0 %vm996_vm4, %v1376_v43  ;;  %vm1000_vm5 = vmpackc.low %vm336_vm2, %vm336_vm2 }
  0xf3   : > { %1001 = vmatprep.mubr.msk.bf16.mxu1 %vm1000_vm5, %v1376_v43  ;;  %vm998_vm6 = vmpackc.low %vm333_vm0, %vm333_vm0 }
  0xf4   : > { %999 = vmatmul.mubr.msk.bf16.vlgmr.msra.gmra.mrb[0].mxu0 %vm998_vm6, %v1376_v43  ;;  %vm1002_vm7 = vmpackc.low %vm335_vm3, %vm335_vm3 }
  0xf5   : > { %1003 = vmatmul.mubr.msk.bf16.vlgmr.msra.gmra.mrb[0].mxu1 %vm1002_vm7, %v1376_v43  ;;  %1071 = vmatpush3.bf16.msra.mxu0 %v1197_v42 }
  0xf6   : > { %1072 = vmatprep.subr.bf16.mxu0 %v1198_v44  ;;  %813 = vmatprep.mubr.bf16.mxu0 %v291_v45 }
  0xf9   : > { %1073 = vmatpush3.bf16.msra.mxu0 %v1199_v46 }
  0xfa   : > { %1074 = vmatprep.subr.bf16.mxu0 %v1200_v47 }
  0xfd   : > { %1075 = vmatpush3.bf16.msra.mxu0 %v1201_v48 }
  0xfe   : > { %1076 = vmatprep.subr.bf16.mxu0 %v1202_v49 }
 0x101   : > { %1077 = vmatpush3.bf16.msra.mxu0 %v1203_v50 }
 0x102   : > { %1078 = vmatprep.subr.bf16.mxu0 %v1204_v51 }
 0x105   : > { %1079 = vmatpush3.bf16.msra.mxu0 %v1205_v52 }
 0x106   : > { %1080 = vmatprep.subr.bf16.mxu0 %v1206_v53 }
 0x109   : > { %1081 = vmatpush3.bf16.msra.mxu0 %v1207_v54 }
 0x10a   : > { %1082 = vmatprep.subr.bf16.mxu0 %v1208_v55 }
 0x10d   : > { %1083 = vmatpush3.bf16.msra.mxu0 %v1209_v56 }
 0x10e   : > { %1084 = vmatprep.subr.bf16.mxu0 %v1210_v57 }
 0x111   : > { %1085 = vmatpush3.bf16.msra.mxu0 %v1211_v58 }
 0x114   : > { %814 = vmatmul.mubr.bf16.vlgmr.msra.gmra.mrb[4].mxu0 %v290_v60 }
 0x1c7   : > { %v1042_v61 = vpop.f32.mrb[0].mxu0 }
 0x1c8   : > { %v1064_v62 = vpop.f32.mrb[0].mxu1  ;;  %v1043_v63 = vpop.f32.mrb[1].mxu0 }
 0x1c9   : > { %v1044_v0 = vadd.f32 %v1043_v63, %v1042_v61  ;;  %v1065_v1 = vpop.f32.mrb[1].mxu1  ;;  %v1045_v2 = vpop.f32.mrb[2].mxu0 }
 0x1ca   : > { %v1066_v3 = vadd.f32 %v1065_v1, %v1064_v62  ;;  %v1067_v4 = vpop.f32.mrb[2].mxu1  ;;  %v1046_v5 = vpop.f32.mrb[3].mxu0 }
 0x1cb   : > { %v1068_v6 = vpop.f32.mrb[3].mxu1 }
 0x1cc   : > { %v680_v7 = vadd.f32 %v1066_v3, %v1044_v0 }
 0x1e7   : > { %v1086_v8 = vpop.f32.mrb[4].mxu0 }
 0x1e8   : > { %v1087_v9 = vpop.f32.mrb[5].mxu0 }
 0x1e9   : > { %v1088_v10 = vadd.f32 %v1087_v9, %v1086_v8  ;;  %v1089_v11 = vpop.f32.mrb[6].mxu0 }
 0x1ea   : > { %v1090_v13 = vpop.f32.mrb[7].mxu0 }
 0x1eb   : > { %v816_v14 = vadd.f32 %v1088_v10, %v680_v7 }
 0x1ed   : > { %v828_v15 = vadd.f32 %v1020_v12, %v816_v14 }
 0x1ef   : > { %v829_v16 = vpack.c.bf16 %v828_v15, %v828_v15 }
 0x1f1   : > { %830 = vst [vmem:[%s282_s15] sm:$0xf] %v829_v16 }
 0x1f2   : > { %1311 = shalt.err (!%p1308_p13)
}
 0x1f3   : > { %s1312_s12 = scalar_lea.hbm %s1606_s29, 64  ;;  %s1316_s24 = scalar_lea.hbm %s1655_s5, 128 }
 0x1f4   : > { %p1313_p6 = scmp.ne.s32.totalorder %s1606_s29, %s1312_s12  ;;  %p1317_p5 = scmp.lt.u32.totalorder %s1606_s29, %s1655_s5 }
 0x1f5   : > { %p1318_p8 = scmp.lt.u32.totalorder %s1316_s24, %s1312_s12  ;;  %p1320_p0 = scmp.lt.u32.totalorder %s1312_s12, %s1606_s29 }
 0x1f6   : > { %p1314_p10 = pnand %p1313_p6, %p1669_p1 }
 0x1f7   : > { %p1319_p11 = por %p1318_p8, %p1317_p5 }
 0x1f8   : > { %p1315_p4 = pneg %p1314_p10 }
 0x1f9   : > { %p1321_p3 = por %p1320_p0, %p1319_p11 }
 0x1fb   : > { %p1322_p7 = pnand %p1321_p3, %p1315_p4 }
 0x1fd   : > { %1325 = shalt.err (!%p1322_p7)
}
 0x1fe   : > { %1102 = dma.vmem_to_hbm [thread:$0]  (%p1669_p1), %s1608_s16, 64, %s1606_s29, %s832_s17  }
 0x1ff PF: > { %s857_s30 = sand.u32 1, %s1356_s18   ;;  %p1670_p9 = scmp.ne.s32.totalorder %s1660_s25, 0 }
 0x200   : > { %p1671_p12 = scmp.ge.s32.totalorder %s1368_s21, 2  ;;  %s858_s15 = scalar_lea.sflag [#allocation4], %s857_s30 }
 0x202   : > { %p1116_p2 = pnand %p1671_p12, %p1670_p9 }
 0x204   : > { %1351 = dma.done.wait (!%p1116_p2), %s858_s15, 64  }
 0x205   : > { %1353 = vsyncadd (!%p1116_p2), %s858_s15, 4294967232  ;;  %p19_p13 = scmp.ge.s32.totalorder %s1518_s14, 4   ;;  %s1672_s18 = smov %s1360_s19 }
 0x206   : > { %s1673_s19 = smov %s1364_s20  ;;  %s1674_s20 = smov %s1534_s27 }
 0x207   : > { %s1675_s21 = smov %s1518_s14  ;;  %21 = sbr.rel (!%p19_p13) target bundleno = 6 (0x6), region = 96 }
 0x20e   :  { %863 = vsyncpa [#allocation3], 1 }
 0x20f   :  { %865 = vsyncpa [#allocation3 + $0x1], 1 }
 0x210   :  { %866 = vsyncpa [#allocation6], 1 }
 0x211   :  { %867 = vsyncpa [#allocation4], 1 }
 0x212   :  { %869 = vsyncpa [#allocation4 + $0x1], 1 }

</bundles_post_ra>
